<compile_context>
chip_gen: v6e
topology: v6e:2x2x1
jax: 0.10.0
libtpu: 0.0.40
codegen_flags: <defaults>
</compile_context>

<pallas_src>
import functools

import jax
import jax.numpy as jnp
from jax.experimental import pallas as pl
from jax.experimental.pallas import tpu as pltpu


# ----------------------------------------------------------------------------
# Kernel
# ----------------------------------------------------------------------------
def _mmoe_gate_kernel(x_ref, w_ref, expert_ref, mixed_ref, gate_ref,
                      acc_ref, gate_sc_ref, *, normalize):
    # x_ref:       (tm, D)     shared-feature row tile (native dtype)
    # w_ref:       (D, E)      full gate weight (transposed nn.Linear weight)
    # expert_ref:  (1, tm, D)  one expert's slab for this row tile
    # mixed_ref:   (tm, D)     resident output block (written at e == E-1)
    # gate_ref:    (tm, E)     resident output block (written at e == 0)
    # acc_ref:     (tm, D) f32 scratch accumulator
    # gate_sc_ref: (tm, E) f32 scratch gate, reused for e > 0
    e = pl.program_id(1)
    num_experts = pl.num_programs(1)

    @pl.when(e == 0)
    def _():
        # Gate projection on the MXU in native dtype, f32 accumulation.
        gate_raw = jnp.dot(x_ref[...], w_ref[...],
                           preferred_element_type=jnp.float32)       # (tm, E)
        if normalize == "softmax":
            m = jnp.max(gate_raw, axis=-1, keepdims=True)
            p = jnp.exp(gate_raw - m)
            denom = jnp.sum(p, axis=-1, keepdims=True)
            r = pl.reciprocal(denom, approx=True)                    # EUP
            r = r * (2.0 - denom * r)                                # 1 Newton step
            gate = p * r
        elif normalize == "sigmoid":
            gate = jax.nn.sigmoid(gate_raw)
        else:
            gate = gate_raw
        gate_sc_ref[...] = gate
        gate_ref[...] = gate.astype(gate_ref.dtype)
        acc_ref[...] = jnp.zeros_like(acc_ref)

    # Select column e of the cached gate (tiny (tm, E) mask+reduce; avoids a
    # dynamic lane slice) and accumulate this expert's contribution in f32.
    gate = gate_sc_ref[...]                                          # (tm, E) f32
    col = jax.lax.broadcasted_iota(jnp.int32, gate.shape, 1)
    scale = jnp.sum(jnp.where(col == e, gate, 0.0), axis=-1,
                    keepdims=True)                                   # (tm, 1)
    acc_ref[...] += expert_ref[0].astype(jnp.float32) * scale

    @pl.when(e == num_experts - 1)
    def _():
        mixed_ref[...] = acc_ref[...].astype(mixed_ref.dtype)


# ----------------------------------------------------------------------------
# Tile / VMEM sizing helpers
# ----------------------------------------------------------------------------
def _round_up(x, m):
    return ((x + m - 1) // m) * m


def _sublane_pack(itemsize):
    """Rows per packed sublane group: 8 for f32, 16 for bf16, 32 for int8."""
    return max(8, 32 // itemsize)


@functools.lru_cache(maxsize=1)
def _vmem_capacity_bytes():
    """Per-core VMEM capacity; conservative 64 MiB (v7x) fallback."""
    try:
        info = pltpu.get_tpu_info()
        for name in ("vmem_capacity_bytes", "vmem_size_bytes"):
            cap = getattr(info, name, None)
            if cap:
                return int(cap)
    except Exception:
        pass
    return 64 << 20


def _per_step_vmem_bytes(tm, D, E, itemsize):
    """VMEM for one grid step: double-buffered tiles (lane/sublane padded)
    plus the f32 scratch accumulator and gate scratch."""
    d_pad = _round_up(D, 128)
    e_pad = _round_up(E, 128)
    tm_pad = _round_up(tm, 8)
    expert_in = 2 * tm_pad * d_pad * itemsize        # streamed expert slab
    x_in = 2 * tm_pad * d_pad * itemsize             # shared-feature tile
    w_in = 2 * _round_up(D, 8) * e_pad * itemsize    # gate weight (small)
    mixed_out = 2 * tm_pad * d_pad * itemsize
    gate_out = 2 * tm_pad * e_pad * itemsize
    scratch = tm_pad * d_pad * 4 + tm_pad * e_pad * 4   # f32 acc + gate
    return expert_in + x_in + w_in + mixed_out + gate_out + scratch


def _choose_tm(M, D, E, itemsize, *, max_rows_per_tile, vmem_budget_bytes):
    """Largest row tile (sublane-pack aligned) fitting the VMEM budget;
    prefers a divisor of M to avoid a ragged last tile but does not require
    one (the grid uses pl.cdiv)."""
    pack = _sublane_pack(itemsize)
    cap = min(max(M, 1), max_rows_per_tile)

    def fits(tm):
        return _per_step_vmem_bytes(tm, D, E, itemsize) <= vmem_budget_bytes

    best_div = 0
    for tm in range(cap, 0, -1):
        if M % tm:
            continue
        if tm % pack and tm != M:
            continue
        if fits(tm):
            best_div = tm
            break

    best_any = 0
    tm = (cap // pack) * pack
    while tm >= pack:
        if fits(tm):
            best_any = tm
            break
        tm -= pack

    tm = max(best_div, best_any)
    if tm == 0:
        tm = M if M < pack else pack   # tiny-problem / huge-D fallback
    return tm


# ----------------------------------------------------------------------------
# Wrapper
# ----------------------------------------------------------------------------
@functools.partial(jax.jit,
                   static_argnames=("normalize", "max_rows_per_tile"))
def mmoe_gate_forward(shared_feature, expert_outputs, w_gate, *,
                      normalize="softmax", max_rows_per_tile=1024):
    """shared_feature: (B, L, D); expert_outputs: (E, B, L, D); w_gate: (E, D)."""
    B, L, D = shared_feature.shape
    E = w_gate.shape[0]
    M = B * L
    dtype = shared_feature.dtype
    itemsize = jnp.dtype(dtype).itemsize

    cap = _vmem_capacity_bytes()
    budget = int(0.70 * cap)                      # per-core, generation-aware
    tm = _choose_tm(M, D, E, itemsize,
                    max_rows_per_tile=max_rows_per_tile,
                    vmem_budget_bytes=budget)
    n_row_tiles = pl.cdiv(M, tm)

    x = shared_feature.reshape(M, D)
    experts = expert_outputs.reshape(E, M, D)
    w_t = w_gate.T                                # (D, E)

    per_step = _per_step_vmem_bytes(tm, D, E, itemsize)
    vmem_limit = int(min(max(per_step + per_step // 4 + (4 << 20), 16 << 20),
                         int(0.9 * cap)))

    kernel = functools.partial(_mmoe_gate_kernel, normalize=normalize)

    mixed, gate = pl.pallas_call(
        kernel,
        out_shape=(
            jax.ShapeDtypeStruct((M, D), dtype),
            jax.ShapeDtypeStruct((M, E), dtype),
        ),
        grid_spec=pltpu.PrefetchScalarGridSpec(
            num_scalar_prefetch=0,
            grid=(n_row_tiles, E),                 # E = streamed reduction axis
            in_specs=[
                pl.BlockSpec((tm, D), lambda i, e: (i, 0)),        # x row tile
                pl.BlockSpec((D, E), lambda i, e: (0, 0)),         # full weight
                pl.BlockSpec((1, tm, D), lambda i, e: (e, i, 0)),  # expert slab
            ],
            out_specs=[
                pl.BlockSpec((tm, D), lambda i, e: (i, 0)),        # mixed (resident)
                pl.BlockSpec((tm, E), lambda i, e: (i, 0)),        # gate (resident)
            ],
            scratch_shapes=[
                pltpu.VMEM((tm, D), jnp.float32),                  # f32 accumulator
                pltpu.VMEM((tm, E), jnp.float32),                  # cached gate
            ],
        ),
        compiler_params=pltpu.CompilerParams(
            dimension_semantics=("parallel", "arbitrary"),
            vmem_limit_bytes=vmem_limit,
        ),
    )(x, w_t, experts)

    return mixed.reshape(B, L, D), gate.reshape(B, L, E)


# ----------------------------------------------------------------------------
# Reference + self-test
# ----------------------------------------------------------------------------
def mmoe_gate_reference(shared_feature, expert_outputs, w_gate,
                        normalize="softmax"):
    gate_raw = jnp.einsum("bld,ed->ble", shared_feature, w_gate,
                          precision=jax.lax.Precision.HIGHEST)
    if normalize == "softmax":
        gate = jax.nn.softmax(gate_raw, axis=-1)
    elif normalize == "sigmoid":
        gate = jax.nn.sigmoid(gate_raw)
    else:
        gate = gate_raw
    stack = jnp.moveaxis(expert_outputs, 0, 2)      # (B, L, E, D)
    mixed = jnp.sum(stack * gate[..., None], axis=2)
    return mixed, gate


if __name__ == "__main__":
    B, L, D, E = 2, 8, 32, 4   # batch, seq, input_dim, num_experts

    key = jax.random.PRNGKey(0)
    k_x, k_w, k_e = jax.random.split(key, 3)

    shared_feature = jax.random.normal(k_x, (B, L, D), dtype=jnp.float32)
    # Deterministic init of nn.Linear(input_dim, num_experts, bias=False).weight: (E, D)
    bound = 1.0 / (D ** 0.5)
    w_gate = jax.random.uniform(k_w, (E, D), minval=-bound, maxval=bound,
                                dtype=jnp.float32)
    expert_outputs = jax.random.normal(k_e, (E, B, L, D), dtype=jnp.float32)

    # --- softmax (module default), auto tile -------------------------------
    mixed_ref_v, gate_ref_v = mmoe_gate_reference(shared_feature,
                                                  expert_outputs, w_gate)
    mixed, gate = mmoe_gate_forward(shared_feature, expert_outputs, w_gate)
    jax.block_until_ready((mixed, gate))
    assert jnp.allclose(mixed, mixed_ref_v, atol=1e-4, rtol=1e-4)
    assert jnp.allclose(gate, gate_ref_v, atol=1e-4, rtol=1e-4)

    # --- softmax, forced small tile (multi-step row grid / pipelining) -----
    mixed2, gate2 = mmoe_gate_forward(shared_feature, expert_outputs, w_gate,
                                      max_rows_per_tile=8)
    jax.block_until_ready((mixed2, gate2))
    assert jnp.allclose(mixed2, mixed_ref_v, atol=1e-4, rtol=1e-4)
    assert jnp.allclose(gate2, gate_ref_v, atol=1e-4, rtol=1e-4)

    # --- sigmoid normalization path -----------------------------------------
    mixed_s_ref, gate_s_ref = mmoe_gate_reference(shared_feature,
                                                  expert_outputs, w_gate,
                                                  normalize="sigmoid")
    mixed_s, gate_s = mmoe_gate_forward(shared_feature, expert_outputs,
                                        w_gate, normalize="sigmoid")
    jax.block_until_ready((mixed_s, gate_s))
    assert jnp.allclose(mixed_s, mixed_s_ref, atol=1e-4, rtol=1e-4)
    assert jnp.allclose(gate_s, gate_s_ref, atol=1e-4, rtol=1e-4)

    print("KERNEL_OK")
</pallas_src>

<mosaic_0001>
module attributes {stable_mosaic.version = 11 : i64} {
  func.func @_mmoe_gate_kernel(%arg0: i32, %arg1: i32, %arg2: memref<16x32xf32, #tpu.memory_space<vmem>>, %arg3: memref<32x4xf32, #tpu.memory_space<vmem>>, %arg4: memref<1x16x32xf32, #tpu.memory_space<vmem>>, %arg5: memref<16x32xf32, #tpu.memory_space<vmem>>, %arg6: memref<16x4xf32, #tpu.memory_space<vmem>>, %arg7: memref<16x32xf32, #tpu.memory_space<vmem>>, %arg8: memref<16x4xf32, #tpu.memory_space<vmem>>) attributes {dimension_semantics = [#tpu.dimension_semantics<parallel>, #tpu.dimension_semantics<arbitrary>], iteration_bounds = array<i64: 1, 4>, scalar_prefetch = 0 : i64, scratch_operands = 2 : i64, tpu.core_type = #tpu.core_type<tc>, window_params = [{transform_indices = @transform_0, window_bounds = array<i64: 16, 32>}, {pipeline_mode = #tpu.pipeline_mode<synchronous>, transform_indices = @transform_1, window_bounds = array<i64: 32, 4>}, {transform_indices = @transform_2, window_bounds = array<i64: 1, 16, 32>}, {transform_indices = @transform_3, window_bounds = array<i64: 16, 32>}, {transform_indices = @transform_4, window_bounds = array<i64: 16, 4>}]} {
    %c0_i32 = arith.constant 0 : i32
    %0 = arith.cmpi eq, %arg1, %c0_i32 : i32
    %1 = arith.extui %0 : i1 to i32
    %c0_i32_0 = arith.constant 0 : i32
    %2 = arith.cmpi ne, %1, %c0_i32_0 : i32
    scf.if %2 {
      %c0_11 = arith.constant 0 : index
      %c0_12 = arith.constant 0 : index
      %21 = vector.load %arg2[%c0_11, %c0_12] : memref<16x32xf32, #tpu.memory_space<vmem>>, vector<16x32xf32>
      %c0_13 = arith.constant 0 : index
      %c0_14 = arith.constant 0 : index
      %22 = vector.load %arg3[%c0_13, %c0_14] : memref<32x4xf32, #tpu.memory_space<vmem>>, vector<32x4xf32>
      %cst_15 = arith.constant dense<0.000000e+00> : vector<16x4xf32>
      %23 = tpu.matmul %21, %22, %cst_15 {dimension_numbers = #tpu.dot_dimension_numbers<[1], [0], [0], [1], [0, 0, 1, 1], [], []>} : vector<16x32xf32>, vector<32x4xf32>, vector<16x4xf32> -> vector<16x4xf32>
      %cst_16 = arith.constant dense<0xFF800000> : vector<16xf32>
      %24 = vector.multi_reduction <maximumf>, %23, %cst_16 [1] : vector<16x4xf32> to vector<16xf32>
      %25 = vector.shape_cast %24 : vector<16xf32> to vector<16x1xf32>
      %26 = vector.broadcast %25 : vector<16x1xf32> to vector<16x4xf32>
      %27 = arith.subf %23, %26 : vector<16x4xf32>
      %28 = math.exp %27 : vector<16x4xf32>
      %cst_17 = arith.constant dense<0.000000e+00> : vector<16xf32>
      %29 = vector.multi_reduction <add>, %28, %cst_17 [1] : vector<16x4xf32> to vector<16xf32>
      %30 = vector.shape_cast %29 : vector<16xf32> to vector<16x1xf32>
      %31 = tpu.reciprocal %30 {approx = true} : vector<16x1xf32> -> vector<16x1xf32>
      %32 = arith.mulf %30, %31 : vector<16x1xf32>
      %cst_18 = arith.constant 2.000000e+00 : f32
      %33 = vector.broadcast %cst_18 : f32 to vector<16x1xf32>
      %34 = arith.subf %33, %32 : vector<16x1xf32>
      %35 = arith.mulf %31, %34 : vector<16x1xf32>
      %36 = vector.broadcast %35 : vector<16x1xf32> to vector<16x4xf32>
      %37 = arith.mulf %28, %36 : vector<16x4xf32>
      %c0_19 = arith.constant 0 : index
      %c0_20 = arith.constant 0 : index
      %38 = vector.load %arg8[%c0_19, %c0_20] : memref<16x4xf32, #tpu.memory_space<vmem>>, vector<16x4xf32>
      tpu.vector_store %arg8[%c0_19, %c0_20], %37 {strides = array<i32>} : memref<16x4xf32, #tpu.memory_space<vmem>>, vector<16x4xf32>,
      %c0_21 = arith.constant 0 : index
      %c0_22 = arith.constant 0 : index
      %39 = vector.load %arg6[%c0_21, %c0_22] : memref<16x4xf32, #tpu.memory_space<vmem>>, vector<16x4xf32>
      tpu.vector_store %arg6[%c0_21, %c0_22], %37 {strides = array<i32>} : memref<16x4xf32, #tpu.memory_space<vmem>>, vector<16x4xf32>,
      %cst_23 = arith.constant 0.000000e+00 : f32
      %40 = vector.broadcast %cst_23 : f32 to vector<16x32xf32>
      %c0_24 = arith.constant 0 : index
      %c0_25 = arith.constant 0 : index
      %41 = vector.load %arg7[%c0_24, %c0_25] : memref<16x32xf32, #tpu.memory_space<vmem>>, vector<16x32xf32>
      tpu.vector_store %arg7[%c0_24, %c0_25], %40 {strides = array<i32>} : memref<16x32xf32, #tpu.memory_space<vmem>>, vector<16x32xf32>,
    } else {
    }
    %c0 = arith.constant 0 : index
    %c0_1 = arith.constant 0 : index
    %3 = vector.load %arg8[%c0, %c0_1] : memref<16x4xf32, #tpu.memory_space<vmem>>, vector<16x4xf32>
    %4 = tpu.iota {dimensions = array<i32: 1>} : vector<16x4xi32>
    %5 = vector.broadcast %arg1 : i32 to vector<16x4xi32>
    %6 = arith.cmpi eq, %4, %5 : vector<16x4xi32>
    %cst = arith.constant 0.000000e+00 : f32
    %7 = vector.broadcast %cst : f32 to vector<16x4xf32>
    %8 = arith.select %6, %3, %7 : vector<16x4xi1>, vector<16x4xf32>
    %cst_2 = arith.constant dense<0.000000e+00> : vector<16xf32>
    %9 = vector.multi_reduction <add>, %8, %cst_2 [1] : vector<16x4xf32> to vector<16xf32>
    %10 = vector.shape_cast %9 : vector<16xf32> to vector<16x1xf32>
    %c0_3 = arith.constant 0 : index
    %c0_4 = arith.constant 0 : index
    %11 = vector.load %arg7[%c0_3, %c0_4] : memref<16x32xf32, #tpu.memory_space<vmem>>, vector<16x32xf32>
    %c0_5 = arith.constant 0 : index
    %c0_6 = arith.constant 0 : index
    %c0_7 = arith.constant 0 : index
    %12 = vector.load %arg4[%c0_5, %c0_6, %c0_7] : memref<1x16x32xf32, #tpu.memory_space<vmem>>, vector<1x16x32xf32>
    %13 = vector.shape_cast %12 : vector<1x16x32xf32> to vector<16x32xf32>
    %14 = vector.broadcast %10 : vector<16x1xf32> to vector<16x32xf32>
    %15 = arith.mulf %13, %14 : vector<16x32xf32>
    %16 = arith.addf %11, %15 : vector<16x32xf32>
    %c0_8 = arith.constant 0 : index
    %c0_9 = arith.constant 0 : index
    %17 = vector.load %arg7[%c0_8, %c0_9] : memref<16x32xf32, #tpu.memory_space<vmem>>, vector<16x32xf32>
    tpu.vector_store %arg7[%c0_8, %c0_9], %16 {strides = array<i32>} : memref<16x32xf32, #tpu.memory_space<vmem>>, vector<16x32xf32>,
    %c3_i32 = arith.constant 3 : i32
    %18 = arith.cmpi eq, %arg1, %c3_i32 : i32
    %19 = arith.extui %18 : i1 to i32
    %c0_i32_10 = arith.constant 0 : i32
    %20 = arith.cmpi ne, %19, %c0_i32_10 : i32
    scf.if %20 {
      %c0_11 = arith.constant 0 : index
      %c0_12 = arith.constant 0 : index
      %21 = vector.load %arg7[%c0_11, %c0_12] : memref<16x32xf32, #tpu.memory_space<vmem>>, vector<16x32xf32>
      %c0_13 = arith.constant 0 : index
      %c0_14 = arith.constant 0 : index
      %22 = vector.load %arg5[%c0_13, %c0_14] : memref<16x32xf32, #tpu.memory_space<vmem>>, vector<16x32xf32>
      tpu.vector_store %arg5[%c0_13, %c0_14], %21 {strides = array<i32>} : memref<16x32xf32, #tpu.memory_space<vmem>>, vector<16x32xf32>,
    } else {
    }
    return
  }
  func.func @transform_0(%arg0: i32, %arg1: i32) -> (i32, i32) {
    %c0_i32 = arith.constant 0 : i32
    %c0_i32_0 = arith.constant 0 : i32
    return %arg0, %c0_i32 : i32, i32
  }
  func.func @transform_1(%arg0: i32, %arg1: i32) -> (i32, i32) {
    %c0_i32 = arith.constant 0 : i32
    %c0_i32_0 = arith.constant 0 : i32
    %c0_i32_1 = arith.constant 0 : i32
    return %c0_i32, %c0_i32_0 : i32, i32
  }
  func.func @transform_2(%arg0: i32, %arg1: i32) -> (i32, i32, i32) {
    %c0_i32 = arith.constant 0 : i32
    %c0_i32_0 = arith.constant 0 : i32
    return %arg1, %arg0, %c0_i32 : i32, i32, i32
  }
  func.func @transform_3(%arg0: i32, %arg1: i32) -> (i32, i32) {
    %c0_i32 = arith.constant 0 : i32
    %c0_i32_0 = arith.constant 0 : i32
    return %arg0, %c0_i32 : i32, i32
  }
  func.func @transform_4(%arg0: i32, %arg1: i32) -> (i32, i32) {
    %c0_i32 = arith.constant 0 : i32
    %c0_i32_0 = arith.constant 0 : i32
    return %arg0, %c0_i32 : i32, i32
  }
}

</mosaic_0001>

<bundles_post_ra>
// kernel: mmoe_gate_forward.1
= control target key start
LH: loop header
LB: loop body
LE: loop exit
PB: predicated region body
PF: predicated region fallthrough
CT: control target
= control target key end

     0   :  { %10 = vsyncpa [#allocation5], 0  ;;  %s954_s0 = inlined_call_operand.vmem [shape: f32[16,32], index: 0, kind: input, shape index: {}]   ;;  %s955_s1 = inlined_call_operand.vmem [shape: f32[32,4], index: 1, kind: input, shape index: {}]   ;;  %s956_s2 = inlined_call_operand.hbm [shape: f32[4,16,32], index: 2, kind: input, shape index: {}]   ;;  %s957_s3 = inlined_call_operand.hbm [shape: f32[16,32], index: 3, kind: output, shape index: {0}]   ;;  %s958_s4 = inlined_call_operand.vmem [shape: f32[16,4], index: 4, kind: output, shape index: {1}]  }
   0x1   :  { %12 = vsyncpa [#allocation5 + $0x1], 0 }
   0x2   :  { %13 = vsyncpa [#allocation6], 0  ;;  %s798_s15 = smov 0   ;;  %s800_s16 = smov 0  }
   0x3   :  { %s802_s17 = smov 0   ;;  %s804_s18 = smov 0  }
   0x4   :  { %s806_s19 = smov 0   ;;  %s808_s20 = smov 0  }
   0x5 LB: > { %s546_s21 = sadd.s32 4294967295, %s764_s20   ;;  %s28_s22 = sadd.s32 1, %s760_s19  ;;  %s764_s20 = sphi %s808_s20, %s19_s20   ;;  %s760_s19 = sphi %s806_s19, %s967_s19   ;;  %s756_s18 = sphi %s804_s18, %s966_s18   ;;  %s752_s17 = sphi %s802_s17, %s965_s17   ;;  %s748_s16 = sphi %s800_s16, %s964_s16   ;;  %s744_s15 = sphi %s798_s15, %s963_s15  }
   0x6   : > { %p29_p0 = scmp.ge.s32.totalorder %s28_s22, 4  ;;  %s87_s23 = sadd.s32 1, %s752_s17 }
   0x7   : > { %p94_p1 = scmp.ne.s32.totalorder %s752_s17, %s748_s16  ;;  %p95_p2 = scmp.eq.s32.totalorder %s764_s20, 0 }
   0x8   : > { %s969_s22 = smov (%p29_p0, %s28_s22), 0  ;;  %p100_p4 = scmp.ne.s32.totalorder %s748_s16, %s744_s15 }
   0x9   : > { %p834_p3 = por %p95_p2, %p94_p1  ;;  %s82_s25 = ssub.s32 %s760_s19, %s969_s22 }
   0xa   : > { %p101_p5 = scmp.eq.s32.totalorder %s546_s21, 0  ;;  %p85_p6 = scmp.eq.s32.totalorder %s82_s25, 0 }
   0xb   : > { %p593_p8 = scmp.lt.s32.totalorder %s764_s20, 4  ;;  %s188_s28 = sand.u32 1, %s752_s17  }
   0xc   : > { %p843_p7 = por %p101_p5, %p100_p4  ;;  %s565_s29 = sshll.u32 %s760_s19, 8 }
   0xd   : > { %s849_s27 = scalar_select %p85_p6, %s752_s17, %s87_s23  }
   0xe   : > { %s550_s30 = sshll.u32 %s188_s28, 4  ;;  %s200_s7 = scalar_lea.hbm %s956_s2, %s565_s29 }
   0xf   : > { %s192_s8 = scalar_lea.vmem [#allocation4], %s550_s30  ;;  %p858_p9 = pnand %p593_p8, %p834_p3 }
  0x10   : > { %s201_s9 = sshll.u32 %s192_s8, 4  ;;  %s189_s11 = scalar_lea.sflag [#allocation5], %s188_s28  ;;  %s202_s9 = int_to_ptr.vmem [resolvable:$true] %s201_s9 }
  0x11   : > { %p660_p10 = pneg %p858_p9  ;;  %s671_s12 = scalar_lea.vmem %s202_s9, 256 }
  0x12   : > { %p672_p11 = scmp.ne.s32.totalorder %s202_s9, %s671_s12  ;;  %s766_s13 = smov [#allocation4]  }
  0x13   : > { %s676_s14 = sshll.u32 %s766_s13, 4  ;;  %s677_s14 = int_to_ptr.vmem [resolvable:$false] %s676_s14 }
  0x14   : > { %p674_p12 = pnand %p672_p11, %p660_p10  ;;  %s678_s15 = scalar_lea.vmem %s677_s14, 512 }
  0x15   : > { %p679_p0 = scmp.lt.s32.totalorder %s202_s9, %s677_s14  ;;  %p680_p1 = scmp.lt.s32.totalorder %s678_s15, %s671_s12 }
  0x16   : > { %p675_p13 = pneg %p674_p12 }
  0x17   : > { %p681_p2 = por %p680_p1, %p679_p0 }
  0x19   : > { %p682_p3 = pnand %p681_p2, %p675_p13 }
  0x1b   : > { %685 = shalt.err (!%p682_p3)
}
  0x1c   : > { %s767_s23 = smov 128   ;;  %s768_s24 = smov 8  }
  0x1d   : > { %592 = dma.hbm_to_vmem [thread:$0]  (!%p858_p9), %s200_s7, 256, %s202_s9, %s189_s11, %s767_s23, %s767_s23, %s768_s24  }
  0x1e   : > { %p553_p4 = scmp.ge.s32.totalorder %s764_s20, 1  ;;  %p209_p5 = scmp.lt.s32.totalorder %s764_s20, 5 }
  0x20   : > { %p210_p6 = pnand %p553_p4, %p209_p5 }
  0x21   : > { %s215_s25 = sand.u32 (!%p210_p6), 1, %s748_s16  }
  0x22   : > { %213 = sbr.rel (%p210_p6) target bundleno = 752 (0x2f0), region = 32  ;;  %s869_s28 = sshll.u32 (!%p210_p6), %s215_s25, 4 }
  0x23   : > { %s216_s29 = scalar_lea.sflag (!%p210_p6), [#allocation5], %s215_s25  ;;  %s219_s30 = scalar_lea.vmem (!%p210_p6), [#allocation4], %s869_s28 }
  0x27   : > { %735 = dma.done.wait (%p843_p7), %s216_s29, 256  }
  0x28   : > { %737 = vsyncadd (%p843_p7), %s216_s29, 4294967040  ;;  %p555_p8 = scmp.ne.s32.totalorder %s756_s18, 0 }
  0x2a   : > { %266 = sbr.rel (%p555_p8) target bundleno = 574 (0x23e), region = 40 }
  0x2f   : > { %v272_v0 = vld [vmem:[%s955_s1 + $0x18] sm:$0xff]  ;;  %v271_v1 = vld [vmem:[%s955_s1 + $0x10] sm:$0xff]  ;;  %vm273_vm0 = vcmask 261120   ;;  %v267_v2 = vld [vmem:[%s954_s0] sm:$0xff]  ;;  %v769_v3 = vmov 0.0   ;;  %vm355_vm1 = vcmask 31744  }
  0x30   : > { %572 = vmatprep.subr.mxu0 %v272_v0  ;;  %388 = vst.msk [vmem:[#allocation2] sm:$0xff] %vm273_vm0, %v769_v3  ;;  %389 = vst.msk [vmem:[#allocation2 + $0x8] sm:$0xff] %vm273_vm0, %v769_v3  ;;  %v270_v4 = vld [vmem:[%s955_s1 + $0x8] sm:$0xff]  ;;  %580 = vmatprep.mubr.msk.f32.mxu0 %vm273_vm0, %v267_v2  ;;  %v269_v5 = vld [vmem:[%s955_s1] sm:$0xff] }
  0x31   : > { %573 = vmatpush3.msra.mxu0 %v272_v0  ;;  %v268_v6 = vld [vmem:[%s954_s0 + $0x8] sm:$0xff] }
  0x32   : > { %574 = vmatprep.subr.mxu0 %v271_v1 }
  0x33   : > { %575 = vmatpush3.msra.mxu0 %v271_v1 }
  0x34   : > { %576 = vmatprep.subr.mxu0 %v270_v4 }
  0x35   : > { %577 = vmatpush3.msra.mxu0 %v270_v4 }
  0x36   : > { %578 = vmatprep.subr.mxu0 %v269_v5 }
  0x37   : > { %579 = vmatpush3.msra.mxu0 %v269_v5 }
  0x38   : > { %581 = vmatmul.mubr.msk.f32.vlgmr.msra.gmra.mxu0 %vm273_vm0, %v268_v6 }
  0xf8   : > { %v582_v7 = vpop.f32.mrf.mxu0 }
  0xf9   : > { %v359_v10 = vsel %vm355_vm1, %v582_v7, -inf }
  0xfa   : > { %v346_v8 = vpop.f32.mrf.mxu0 }
  0xfb   : > { %v356_v9 = vsel %vm355_vm1, %v346_v8, -inf }
  0xfc   : > { %357 = vmax.xlane.f32.xlu0 %v356_v9 }
 0x100   : > { %360 = vmax.xlane.f32.xlu0 %v359_v10 }
 0x185   : > { %v358_v11 = vpop.xlane.xlu0 %357 }
 0x186   : > { %v362_v12 = vsub.f32 %v346_v8, %v358_v11 }
 0x188   : > { %v364_v13 = vmul.f32 1.442695, %v362_v12 }
 0x189   : > { %v361_v14 = vpop.xlane.xlu0 %360 }
 0x18a   : > { %650 = vpow2.f32 %v364_v13  ;;  %v363_v15 = vsub.f32 %v582_v7, %v361_v14 }
 0x18c   : > { %v366_v16 = vmul.f32 1.442695, %v363_v15 }
 0x18e   : > { %652 = vpow2.f32 %v366_v16 }
 0x197   : > { %v651_v17 = vpop.eup %650 }
 0x198   : > { %v368_v18 = vsel %vm355_vm1, %v651_v17, 0.0 }
 0x199   : > { %369 = vadd.xlane.f32.xlu1 %v368_v18 }
 0x19b   : > { %v653_v19 = vpop.eup %652 }
 0x19c   : > { %v371_v20 = vsel %vm355_vm1, %v653_v19, 0.0 }
 0x19d   : > { %372 = vadd.xlane.f32.xlu1 %v371_v20 }
 0x222   : > { %v370_v21 = vpop.xlane.xlu1 %369 }
 0x223   : > { %654 = vrcp.f32 %v370_v21 }
 0x226   : > { %v373_v22 = vpop.xlane.xlu1 %372 }
 0x227   : > { %656 = vrcp.f32 %v373_v22 }
 0x230   : > { %v655_v23 = vpop.eup %654 }
 0x231   : > { %v376_v24 = vmul.f32 %v655_v23, %v370_v21 }
 0x233   : > { %v378_v25 = vsub.f32 2.0, %v376_v24 }
 0x234   : > { %v657_v26 = vpop.eup %656 }
 0x235   : > { %v380_v27 = vmul.f32 %v655_v23, %v378_v25  ;;  %v377_v28 = vmul.f32 %v657_v26, %v373_v22 }
 0x237   : > { %v382_v29 = vmul.f32 %v651_v17, %v380_v27  ;;  %v379_v30 = vsub.f32 2.0, %v377_v28 }
 0x239   : > { %384 = vst.msk [vmem:[#allocation3] sm:$0xff] %vm355_vm1, %v382_v29  ;;  %386 = vst.msk [vmem:[%s958_s4] sm:$0xff] %vm355_vm1, %v382_v29  ;;  %v381_v31 = vmul.f32 %v657_v26, %v379_v30 }
 0x23b   : > { %v383_v32 = vmul.f32 %v653_v19, %v381_v31 }
 0x23d   : > { %385 = vst.msk [vmem:[#allocation3 + $0x8] sm:$0xff] %vm355_vm1, %v383_v32  ;;  %387 = vst.msk [vmem:[%s958_s4 + $0x8] sm:$0xff] %vm355_vm1, %v383_v32 }
 0x23e PF: > { %v392_v33 = vlaneseq  ;;  %v394_v34 = vstv %s756_s18  ;;  %vm398_vm2 = vcmask 31744   ;;  %v407_v42 = vld [vmem:[%s219_s30] sm:$0xff]  ;;  %vm413_vm4 = vcmask 261120   ;;  %v408_v46 = vld [vmem:[%s219_s30 + $0x8] sm:$0xff]  ;;  %p558_p7 = scmp.ne.s32.totalorder %s756_s18, 3 }
 0x23f   : > { %v405_v43 = vld [vmem:[#allocation2] sm:$0xff]  ;;  %v406_v48 = vld [vmem:[#allocation2 + $0x8] sm:$0xff] }
 0x240   : > { %v390_v35 = vld [vmem:[#allocation3] sm:$0xff]  ;;  %v393_v36 = vand.u32 127, %v392_v33 }
 0x242   : > { %vm395_vm3 = vcmp.eq.s32.totalorder %v393_v36, %v394_v34 }
 0x243   : > { %v396_v38 = vsel %vm395_vm3, %v390_v35, 0.0 }
 0x244   : > { %v391_v37 = vld [vmem:[#allocation3 + $0x8] sm:$0xff]  ;;  %v399_v40 = vsel %vm398_vm2, %v396_v38, 0.0 }
 0x245   : > { %v397_v39 = vsel %vm395_vm3, %v391_v37, 0.0  ;;  %400 = vadd.xlane.f32.xlu0 %v399_v40 }
 0x246   : > { %v402_v41 = vsel %vm398_vm2, %v397_v39, 0.0 }
 0x249   : > { %403 = vadd.xlane.f32.xlu0 %v402_v41 }
 0x2ce   : > { %v401_v44 = vpop.xlane.xlu0 %400 }
 0x2cf   : > { %v409_v45 = vmul.f32 %v407_v42, %v401_v44 }
 0x2d1   : > { %v411_v47 = vadd.f32 %v409_v45, %v405_v43 }
 0x2d2   : > { %v404_v49 = vpop.xlane.xlu0 %403 }
 0x2d3   : > { %414 = vst.msk [vmem:[#allocation2] sm:$0xff] %vm413_vm4, %v411_v47  ;;  %v410_v50 = vmul.f32 %v408_v46, %v404_v49  ;;  %419 = sbr.rel (%p558_p7) target bundleno = 736 (0x2e0), region = 44 }
 0x2d5   : > { %v412_v51 = vadd.f32 %v410_v50, %v406_v48 }
 0x2d7   : > { %415 = vst.msk [vmem:[#allocation2 + $0x8] sm:$0xff] %vm413_vm4, %v412_v51 }
 0x2da   : > { %v420_v52 = vld [vmem:[#allocation2] sm:$0xff] }
 0x2db   : > { %422 = vst.msk [vmem:[#allocation7] sm:$0xff] %vm413_vm4, %v420_v52 }
 0x2de   : > { %v421_v53 = vld [vmem:[#allocation2 + $0x8] sm:$0xff] }
 0x2df   : > { %423 = vst.msk [vmem:[#allocation7 + $0x8] sm:$0xff] %vm413_vm4, %v421_v53 }
 0x2e0 PF: > { %p921_p9 = scmp.eq.s32.totalorder %s546_s21, 3  ;;  %s770_s30 = smov [#allocation7]  }
 0x2e1   : > { %s438_s5 = sshll.u32 %s770_s30, 4  ;;  %s439_s5 = int_to_ptr.vmem [resolvable:$true] %s438_s5 }
 0x2e2   : > { %s686_s6 = scalar_lea.vmem %s439_s5, 256  ;;  %p693_p13 = scmp.lt.s32.totalorder %s439_s5, %s439_s5 }
 0x2e3   : > { %p687_p10 = scmp.ne.s32.totalorder %s439_s5, %s686_s6  ;;  %p694_p0 = scmp.lt.s32.totalorder %s686_s6, %s686_s6 }
 0x2e5   : > { %p688_p11 = pnand %p687_p10, %p921_p9  ;;  %p695_p1 = por %p694_p0, %p693_p13 }
 0x2e7   : > { %p689_p12 = pneg %p688_p11 }
 0x2e9   : > { %p696_p2 = pnand %p695_p1, %p689_p12 }
 0x2eb   : > { %699 = shalt.err (!%p696_p2)
}
 0x2ec   : > { %s771_s18 = smov 128   ;;  %s772_s21 = smov 8  }
 0x2ed   : > { %586 = dma.vmem_to_hbm [thread:$0]  (%p921_p9), %s439_s5, 256, %s957_s3, [#allocation6], %s771_s18, %s771_s18, %s772_s21  }
 0x2ee   : > { %739 = dma.done.wait (%p921_p9), [#allocation6], 256  }
 0x2ef   : > { %741 = vsyncadd (%p921_p9), [#allocation6], 4294967040 }
 0x2f0 PF: > { %s19_s20 = sadd.s32 1, %s764_s20   ;;  %s963_s15 = smov %s748_s16 }
 0x2f1   : > { %p16_p3 = scmp.ge.s32.totalorder %s19_s20, 6   ;;  %s964_s16 = smov %s752_s17 }
 0x2f2   : > { %s965_s17 = smov %s849_s27  ;;  %s966_s18 = smov %s760_s19 }
 0x2f3   : > { %s967_s19 = smov %s969_s22  ;;  %18 = sbr.rel (!%p16_p3) target bundleno = 5 (0x5), region = 93 }
 0x2f8   :  { %466 = vsyncpa [#allocation5], 1 }
 0x2f9   :  { %468 = vsyncpa [#allocation5 + $0x1], 1 }
 0x2fa   :  { %469 = vsyncpa [#allocation6], 1 }
 0x2fb   :  { %471 = vsyncpa [#allocation6 + $0x1], 1 }

</bundles_post_ra>
